<compile_context>
chip_gen: v7x
topology: tpu7x:2x2x1
jax: 0.10.0
libtpu: 0.0.40
codegen_flags: <defaults>
</compile_context>

<pallas_src>
import jax
import jax.numpy as jnp
from jax import lax
from jax.experimental import pallas as pl
from jax.experimental.pallas import tpu as pltpu

INPUT_SIZE = 10   # fixed by nn.LSTM(10, 1)
HIDDEN = 1


def _lstm_kernel(x_ref, wih_ref, whh_ref, b_ref, h0_ref, c0_ref, out_ref):
    """Single-layer LSTM (H=1) forward over the full sequence.

    x_ref   : (T*B, D)   T-major flattened input sequence (VMEM)
    wih_ref : (D, 4*H)   input->gates weights, pre-transposed
    whh_ref : (H, 4*H)   hidden->gates weights, pre-transposed (H == 1)
    b_ref   : (1, 4*H)   combined bias (b_ih + b_hh)
    h0_ref  : (B, H)     initial hidden state
    c0_ref  : (B, H)     initial cell state
    out_ref : (B, T)     hidden state at every timestep (T on the lane axis)
    Gate order matches PyTorch: [i, f, g, o].
    """
    B, T = out_ref.shape

    # --- hoisted input projection: one MXU pass for the whole sequence ------
    xw = jnp.dot(x_ref[...], wih_ref[...],
                 preferred_element_type=jnp.float32) + b_ref[...]     # (T*B, 4)

    w_hh = whh_ref[...]            # (1, 4); H == 1 so h @ W_hh^T == h * w_hh (VPU only)
    h = h0_ref[...]                # (B, 1)
    c = c0_ref[...]                # (B, 1)

    lane_t = lax.broadcasted_iota(jnp.int32, (B, T), 1)
    out_acc = jnp.zeros((B, T), jnp.float32)

    # Statically unrolled recurrence: no MXU, no dynamic slices, no per-step
    # masked HBM stores on the serial dependence chain.
    for t in range(T):
        gates = xw[t * B:(t + 1) * B, :] + h * w_hh     # (B, 4), VPU broadcast
        act = jax.nn.sigmoid(gates)                     # fused sigmoid over whole slab
        g = jnp.tanh(gates[:, 2:3])
        c = act[:, 1:2] * c + act[:, 0:1] * g           # f*c + i*g
        h = act[:, 3:4] * jnp.tanh(c)                   # o*tanh(c)
        out_acc = jnp.where(lane_t == t, h, out_acc)    # place h in lane t

    out_ref[...] = out_acc                              # single lane-dense store


def lstm_forward_pallas(x, w_ih, w_hh, b_ih, b_hh, h0, c0):
    """x: (B, T, 10) float32.  Returns lstm_out: (B, T, 1) float32."""
    B, T, D = x.shape
    assert D == INPUT_SIZE
    # T-major flatten so each timestep's batch rows are contiguous in the projected gates.
    x_tm = jnp.transpose(x, (1, 0, 2)).reshape(T * B, D)
    w_ih_t = jnp.transpose(w_ih)                   # (D, 4*H)
    w_hh_row = jnp.transpose(w_hh)                 # (H, 4*H) = (1, 4)
    bias = (b_ih + b_hh).reshape(1, 4 * HIDDEN)    # (1, 4*H)

    vmem = pltpu.MemorySpace.VMEM
    out_bt = pl.pallas_call(
        _lstm_kernel,
        out_shape=jax.ShapeDtypeStruct((B, T), jnp.float32),
        in_specs=[pl.BlockSpec(memory_space=vmem)] * 6,
        out_specs=pl.BlockSpec(memory_space=vmem),
    )(x_tm, w_ih_t, w_hh_row, bias, h0, c0)
    return out_bt[..., None]                       # (B, T, H=1) — matches `lstm_out`


def lstm_forward_ref(x, w_ih, w_hh, b_ih, b_hh, h0, c0):
    """Pure-JAX reference (same math as torch.nn.LSTM forward)."""
    def step(carry, xt):
        h, c = carry
        gates = xt @ w_ih.T + h @ w_hh.T + b_ih + b_hh
        i_g = jax.nn.sigmoid(gates[:, 0:1])
        f_g = jax.nn.sigmoid(gates[:, 1:2])
        g_g = jnp.tanh(gates[:, 2:3])
        o_g = jax.nn.sigmoid(gates[:, 3:4])
        c_new = f_g * c + i_g * g_g
        h_new = o_g * jnp.tanh(c_new)
        return (h_new, c_new), h_new

    _, hs = lax.scan(step, (h0, c0), jnp.transpose(x, (1, 0, 2)))  # (T, B, H)
    return jnp.transpose(hs, (1, 0, 2))                            # (B, T, H)


if __name__ == "__main__":
    key = jax.random.PRNGKey(0)
    k_seq, k_wih, k_whh, k_bih, k_bhh, k_h0, k_c0 = jax.random.split(key, 7)

    B, T = 2, 8
    # one-hot encoded sequence of digits 0..9, shape (B, T, 10)
    digits = jax.random.randint(k_seq, (B, T), 0, INPUT_SIZE)
    x = jax.nn.one_hot(digits, INPUT_SIZE, dtype=jnp.float32)

    # PyTorch LSTM default init: U(-k, k) with k = 1/sqrt(hidden_size) = 1.0
    w_ih = jax.random.uniform(k_wih, (4 * HIDDEN, INPUT_SIZE), jnp.float32, -1.0, 1.0)
    w_hh = jax.random.uniform(k_whh, (4 * HIDDEN, HIDDEN), jnp.float32, -1.0, 1.0)
    b_ih = jax.random.uniform(k_bih, (4 * HIDDEN,), jnp.float32, -1.0, 1.0)
    b_hh = jax.random.uniform(k_bhh, (4 * HIDDEN,), jnp.float32, -1.0, 1.0)

    # deterministic stand-in for the module's torch.randn initial state
    h0 = jax.random.normal(k_h0, (B, HIDDEN), jnp.float32)
    c0 = jax.random.normal(k_c0, (B, HIDDEN), jnp.float32)

    out = lstm_forward_pallas(x, w_ih, w_hh, b_ih, b_hh, h0, c0)
    out = jax.block_until_ready(out)

    ref = lstm_forward_ref(x, w_ih, w_hh, b_ih, b_hh, h0, c0)
    assert out.shape == (B, T, HIDDEN)
    assert bool(jnp.allclose(out, ref, atol=1e-5, rtol=1e-5)), "mismatch vs reference"

    print("KERNEL_OK")
</pallas_src>

<mosaic_0001>
module attributes {stable_mosaic.version = 11 : i64} {
  func.func @_lstm_kernel(%arg0: memref<16x10xf32, #tpu.memory_space<vmem>>, %arg1: memref<10x4xf32, #tpu.memory_space<vmem>>, %arg2: memref<1x4xf32, #tpu.memory_space<vmem>>, %arg3: memref<1x4xf32, #tpu.memory_space<vmem>>, %arg4: memref<2x1xf32, #tpu.memory_space<vmem>>, %arg5: memref<2x1xf32, #tpu.memory_space<vmem>>, %arg6: memref<2x8xf32, #tpu.memory_space<vmem>>) attributes {dimension_semantics = [], scalar_prefetch = 0 : i64, scratch_operands = 0 : i64, tpu.core_type = #tpu.core_type<tc>} {
    %c0 = arith.constant 0 : index
    %c0_0 = arith.constant 0 : index
    %0 = vector.load %arg0[%c0, %c0_0] : memref<16x10xf32, #tpu.memory_space<vmem>>, vector<16x10xf32>
    %c0_1 = arith.constant 0 : index
    %c0_2 = arith.constant 0 : index
    %1 = vector.load %arg1[%c0_1, %c0_2] : memref<10x4xf32, #tpu.memory_space<vmem>>, vector<10x4xf32>
    %cst = arith.constant dense<0.000000e+00> : vector<16x4xf32>
    %2 = tpu.matmul %0, %1, %cst {dimension_numbers = #tpu.dot_dimension_numbers<[1], [0], [0], [1], [0, 0, 1, 1], [], []>} : vector<16x10xf32>, vector<10x4xf32>, vector<16x4xf32> -> vector<16x4xf32>
    %c0_3 = arith.constant 0 : index
    %c0_4 = arith.constant 0 : index
    %3 = vector.load %arg3[%c0_3, %c0_4] : memref<1x4xf32, #tpu.memory_space<vmem>>, vector<1x4xf32>
    %4 = vector.broadcast %3 : vector<1x4xf32> to vector<16x4xf32>
    %5 = arith.addf %2, %4 : vector<16x4xf32>
    %c0_5 = arith.constant 0 : index
    %c0_6 = arith.constant 0 : index
    %6 = vector.load %arg2[%c0_5, %c0_6] : memref<1x4xf32, #tpu.memory_space<vmem>>, vector<1x4xf32>
    %c0_7 = arith.constant 0 : index
    %c0_8 = arith.constant 0 : index
    %7 = vector.load %arg4[%c0_7, %c0_8] : memref<2x1xf32, #tpu.memory_space<vmem>>, vector<2x1xf32>
    %c0_9 = arith.constant 0 : index
    %c0_10 = arith.constant 0 : index
    %8 = vector.load %arg5[%c0_9, %c0_10] : memref<2x1xf32, #tpu.memory_space<vmem>>, vector<2x1xf32>
    %9 = tpu.iota {dimensions = array<i32: 1>} : vector<2x8xi32>
    %cst_11 = arith.constant 0.000000e+00 : f32
    %10 = vector.broadcast %cst_11 : f32 to vector<2x8xf32>
    %11 = vector.extract_strided_slice %5 {offsets = [0, 0], sizes = [2, 4], strides = [1, 1]} : vector<16x4xf32> to vector<2x4xf32>
    %12 = vector.broadcast %7 : vector<2x1xf32> to vector<2x4xf32>
    %13 = vector.broadcast %6 : vector<1x4xf32> to vector<2x4xf32>
    %14 = arith.mulf %12, %13 : vector<2x4xf32>
    %15 = arith.addf %11, %14 : vector<2x4xf32>
    %16 = arith.negf %15 : vector<2x4xf32>
    %17 = math.exp %16 : vector<2x4xf32>
    %cst_12 = arith.constant 1.000000e+00 : f32
    %18 = vector.broadcast %cst_12 : f32 to vector<2x4xf32>
    %19 = arith.addf %18, %17 : vector<2x4xf32>
    %20 = arith.divf %18, %19 : vector<2x4xf32>
    %21 = vector.extract_strided_slice %15 {offsets = [0, 2], sizes = [2, 1], strides = [1, 1]} : vector<2x4xf32> to vector<2x1xf32>
    %22 = math.tanh %21 : vector<2x1xf32>
    %23 = vector.extract_strided_slice %20 {offsets = [0, 1], sizes = [2, 1], strides = [1, 1]} : vector<2x4xf32> to vector<2x1xf32>
    %24 = arith.mulf %23, %8 : vector<2x1xf32>
    %25 = vector.extract_strided_slice %20 {offsets = [0, 0], sizes = [2, 1], strides = [1, 1]} : vector<2x4xf32> to vector<2x1xf32>
    %26 = arith.mulf %25, %22 : vector<2x1xf32>
    %27 = arith.addf %24, %26 : vector<2x1xf32>
    %28 = vector.extract_strided_slice %20 {offsets = [0, 3], sizes = [2, 1], strides = [1, 1]} : vector<2x4xf32> to vector<2x1xf32>
    %29 = math.tanh %27 : vector<2x1xf32>
    %30 = arith.mulf %28, %29 : vector<2x1xf32>
    %c0_i32 = arith.constant 0 : i32
    %31 = vector.broadcast %c0_i32 : i32 to vector<2x8xi32>
    %32 = arith.cmpi eq, %9, %31 : vector<2x8xi32>
    %33 = vector.shape_cast %30 : vector<2x1xf32> to vector<2x1xf32>
    %34 = vector.broadcast %33 : vector<2x1xf32> to vector<2x8xf32>
    %35 = arith.select %32, %34, %10 : vector<2x8xi1>, vector<2x8xf32>
    %36 = vector.extract_strided_slice %5 {offsets = [2, 0], sizes = [2, 4], strides = [1, 1]} : vector<16x4xf32> to vector<2x4xf32>
    %37 = vector.broadcast %30 : vector<2x1xf32> to vector<2x4xf32>
    %38 = vector.broadcast %6 : vector<1x4xf32> to vector<2x4xf32>
    %39 = arith.mulf %37, %38 : vector<2x4xf32>
    %40 = arith.addf %36, %39 : vector<2x4xf32>
    %41 = arith.negf %40 : vector<2x4xf32>
    %42 = math.exp %41 : vector<2x4xf32>
    %cst_13 = arith.constant 1.000000e+00 : f32
    %43 = vector.broadcast %cst_13 : f32 to vector<2x4xf32>
    %44 = arith.addf %43, %42 : vector<2x4xf32>
    %45 = arith.divf %43, %44 : vector<2x4xf32>
    %46 = vector.extract_strided_slice %40 {offsets = [0, 2], sizes = [2, 1], strides = [1, 1]} : vector<2x4xf32> to vector<2x1xf32>
    %47 = math.tanh %46 : vector<2x1xf32>
    %48 = vector.extract_strided_slice %45 {offsets = [0, 1], sizes = [2, 1], strides = [1, 1]} : vector<2x4xf32> to vector<2x1xf32>
    %49 = arith.mulf %48, %27 : vector<2x1xf32>
    %50 = vector.extract_strided_slice %45 {offsets = [0, 0], sizes = [2, 1], strides = [1, 1]} : vector<2x4xf32> to vector<2x1xf32>
    %51 = arith.mulf %50, %47 : vector<2x1xf32>
    %52 = arith.addf %49, %51 : vector<2x1xf32>
    %53 = vector.extract_strided_slice %45 {offsets = [0, 3], sizes = [2, 1], strides = [1, 1]} : vector<2x4xf32> to vector<2x1xf32>
    %54 = math.tanh %52 : vector<2x1xf32>
    %55 = arith.mulf %53, %54 : vector<2x1xf32>
    %c1_i32 = arith.constant 1 : i32
    %56 = vector.broadcast %c1_i32 : i32 to vector<2x8xi32>
    %57 = arith.cmpi eq, %9, %56 : vector<2x8xi32>
    %58 = vector.shape_cast %55 : vector<2x1xf32> to vector<2x1xf32>
    %59 = vector.broadcast %58 : vector<2x1xf32> to vector<2x8xf32>
    %60 = arith.select %57, %59, %35 : vector<2x8xi1>, vector<2x8xf32>
    %61 = vector.extract_strided_slice %5 {offsets = [4, 0], sizes = [2, 4], strides = [1, 1]} : vector<16x4xf32> to vector<2x4xf32>
    %62 = vector.broadcast %55 : vector<2x1xf32> to vector<2x4xf32>
    %63 = vector.broadcast %6 : vector<1x4xf32> to vector<2x4xf32>
    %64 = arith.mulf %62, %63 : vector<2x4xf32>
    %65 = arith.addf %61, %64 : vector<2x4xf32>
    %66 = arith.negf %65 : vector<2x4xf32>
    %67 = math.exp %66 : vector<2x4xf32>
    %cst_14 = arith.constant 1.000000e+00 : f32
    %68 = vector.broadcast %cst_14 : f32 to vector<2x4xf32>
    %69 = arith.addf %68, %67 : vector<2x4xf32>
    %70 = arith.divf %68, %69 : vector<2x4xf32>
    %71 = vector.extract_strided_slice %65 {offsets = [0, 2], sizes = [2, 1], strides = [1, 1]} : vector<2x4xf32> to vector<2x1xf32>
    %72 = math.tanh %71 : vector<2x1xf32>
    %73 = vector.extract_strided_slice %70 {offsets = [0, 1], sizes = [2, 1], strides = [1, 1]} : vector<2x4xf32> to vector<2x1xf32>
    %74 = arith.mulf %73, %52 : vector<2x1xf32>
    %75 = vector.extract_strided_slice %70 {offsets = [0, 0], sizes = [2, 1], strides = [1, 1]} : vector<2x4xf32> to vector<2x1xf32>
    %76 = arith.mulf %75, %72 : vector<2x1xf32>
    %77 = arith.addf %74, %76 : vector<2x1xf32>
    %78 = vector.extract_strided_slice %70 {offsets = [0, 3], sizes = [2, 1], strides = [1, 1]} : vector<2x4xf32> to vector<2x1xf32>
    %79 = math.tanh %77 : vector<2x1xf32>
    %80 = arith.mulf %78, %79 : vector<2x1xf32>
    %c2_i32 = arith.constant 2 : i32
    %81 = vector.broadcast %c2_i32 : i32 to vector<2x8xi32>
    %82 = arith.cmpi eq, %9, %81 : vector<2x8xi32>
    %83 = vector.shape_cast %80 : vector<2x1xf32> to vector<2x1xf32>
    %84 = vector.broadcast %83 : vector<2x1xf32> to vector<2x8xf32>
    %85 = arith.select %82, %84, %60 : vector<2x8xi1>, vector<2x8xf32>
    %86 = vector.extract_strided_slice %5 {offsets = [6, 0], sizes = [2, 4], strides = [1, 1]} : vector<16x4xf32> to vector<2x4xf32>
    %87 = vector.broadcast %80 : vector<2x1xf32> to vector<2x4xf32>
    %88 = vector.broadcast %6 : vector<1x4xf32> to vector<2x4xf32>
    %89 = arith.mulf %87, %88 : vector<2x4xf32>
    %90 = arith.addf %86, %89 : vector<2x4xf32>
    %91 = arith.negf %90 : vector<2x4xf32>
    %92 = math.exp %91 : vector<2x4xf32>
    %cst_15 = arith.constant 1.000000e+00 : f32
    %93 = vector.broadcast %cst_15 : f32 to vector<2x4xf32>
    %94 = arith.addf %93, %92 : vector<2x4xf32>
    %95 = arith.divf %93, %94 : vector<2x4xf32>
    %96 = vector.extract_strided_slice %90 {offsets = [0, 2], sizes = [2, 1], strides = [1, 1]} : vector<2x4xf32> to vector<2x1xf32>
    %97 = math.tanh %96 : vector<2x1xf32>
    %98 = vector.extract_strided_slice %95 {offsets = [0, 1], sizes = [2, 1], strides = [1, 1]} : vector<2x4xf32> to vector<2x1xf32>
    %99 = arith.mulf %98, %77 : vector<2x1xf32>
    %100 = vector.extract_strided_slice %95 {offsets = [0, 0], sizes = [2, 1], strides = [1, 1]} : vector<2x4xf32> to vector<2x1xf32>
    %101 = arith.mulf %100, %97 : vector<2x1xf32>
    %102 = arith.addf %99, %101 : vector<2x1xf32>
    %103 = vector.extract_strided_slice %95 {offsets = [0, 3], sizes = [2, 1], strides = [1, 1]} : vector<2x4xf32> to vector<2x1xf32>
    %104 = math.tanh %102 : vector<2x1xf32>
    %105 = arith.mulf %103, %104 : vector<2x1xf32>
    %c3_i32 = arith.constant 3 : i32
    %106 = vector.broadcast %c3_i32 : i32 to vector<2x8xi32>
    %107 = arith.cmpi eq, %9, %106 : vector<2x8xi32>
    %108 = vector.shape_cast %105 : vector<2x1xf32> to vector<2x1xf32>
    %109 = vector.broadcast %108 : vector<2x1xf32> to vector<2x8xf32>
    %110 = arith.select %107, %109, %85 : vector<2x8xi1>, vector<2x8xf32>
    %111 = vector.extract_strided_slice %5 {offsets = [8, 0], sizes = [2, 4], strides = [1, 1]} : vector<16x4xf32> to vector<2x4xf32>
    %112 = vector.broadcast %105 : vector<2x1xf32> to vector<2x4xf32>
    %113 = vector.broadcast %6 : vector<1x4xf32> to vector<2x4xf32>
    %114 = arith.mulf %112, %113 : vector<2x4xf32>
    %115 = arith.addf %111, %114 : vector<2x4xf32>
    %116 = arith.negf %115 : vector<2x4xf32>
    %117 = math.exp %116 : vector<2x4xf32>
    %cst_16 = arith.constant 1.000000e+00 : f32
    %118 = vector.broadcast %cst_16 : f32 to vector<2x4xf32>
    %119 = arith.addf %118, %117 : vector<2x4xf32>
    %120 = arith.divf %118, %119 : vector<2x4xf32>
    %121 = vector.extract_strided_slice %115 {offsets = [0, 2], sizes = [2, 1], strides = [1, 1]} : vector<2x4xf32> to vector<2x1xf32>
    %122 = math.tanh %121 : vector<2x1xf32>
    %123 = vector.extract_strided_slice %120 {offsets = [0, 1], sizes = [2, 1], strides = [1, 1]} : vector<2x4xf32> to vector<2x1xf32>
    %124 = arith.mulf %123, %102 : vector<2x1xf32>
    %125 = vector.extract_strided_slice %120 {offsets = [0, 0], sizes = [2, 1], strides = [1, 1]} : vector<2x4xf32> to vector<2x1xf32>
    %126 = arith.mulf %125, %122 : vector<2x1xf32>
    %127 = arith.addf %124, %126 : vector<2x1xf32>
    %128 = vector.extract_strided_slice %120 {offsets = [0, 3], sizes = [2, 1], strides = [1, 1]} : vector<2x4xf32> to vector<2x1xf32>
    %129 = math.tanh %127 : vector<2x1xf32>
    %130 = arith.mulf %128, %129 : vector<2x1xf32>
    %c4_i32 = arith.constant 4 : i32
    %131 = vector.broadcast %c4_i32 : i32 to vector<2x8xi32>
    %132 = arith.cmpi eq, %9, %131 : vector<2x8xi32>
    %133 = vector.shape_cast %130 : vector<2x1xf32> to vector<2x1xf32>
    %134 = vector.broadcast %133 : vector<2x1xf32> to vector<2x8xf32>
    %135 = arith.select %132, %134, %110 : vector<2x8xi1>, vector<2x8xf32>
    %136 = vector.extract_strided_slice %5 {offsets = [10, 0], sizes = [2, 4], strides = [1, 1]} : vector<16x4xf32> to vector<2x4xf32>
    %137 = vector.broadcast %130 : vector<2x1xf32> to vector<2x4xf32>
    %138 = vector.broadcast %6 : vector<1x4xf32> to vector<2x4xf32>
    %139 = arith.mulf %137, %138 : vector<2x4xf32>
    %140 = arith.addf %136, %139 : vector<2x4xf32>
    %141 = arith.negf %140 : vector<2x4xf32>
    %142 = math.exp %141 : vector<2x4xf32>
    %cst_17 = arith.constant 1.000000e+00 : f32
    %143 = vector.broadcast %cst_17 : f32 to vector<2x4xf32>
    %144 = arith.addf %143, %142 : vector<2x4xf32>
    %145 = arith.divf %143, %144 : vector<2x4xf32>
    %146 = vector.extract_strided_slice %140 {offsets = [0, 2], sizes = [2, 1], strides = [1, 1]} : vector<2x4xf32> to vector<2x1xf32>
    %147 = math.tanh %146 : vector<2x1xf32>
    %148 = vector.extract_strided_slice %145 {offsets = [0, 1], sizes = [2, 1], strides = [1, 1]} : vector<2x4xf32> to vector<2x1xf32>
    %149 = arith.mulf %148, %127 : vector<2x1xf32>
    %150 = vector.extract_strided_slice %145 {offsets = [0, 0], sizes = [2, 1], strides = [1, 1]} : vector<2x4xf32> to vector<2x1xf32>
    %151 = arith.mulf %150, %147 : vector<2x1xf32>
    %152 = arith.addf %149, %151 : vector<2x1xf32>
    %153 = vector.extract_strided_slice %145 {offsets = [0, 3], sizes = [2, 1], strides = [1, 1]} : vector<2x4xf32> to vector<2x1xf32>
    %154 = math.tanh %152 : vector<2x1xf32>
    %155 = arith.mulf %153, %154 : vector<2x1xf32>
    %c5_i32 = arith.constant 5 : i32
    %156 = vector.broadcast %c5_i32 : i32 to vector<2x8xi32>
    %157 = arith.cmpi eq, %9, %156 : vector<2x8xi32>
    %158 = vector.shape_cast %155 : vector<2x1xf32> to vector<2x1xf32>
    %159 = vector.broadcast %158 : vector<2x1xf32> to vector<2x8xf32>
    %160 = arith.select %157, %159, %135 : vector<2x8xi1>, vector<2x8xf32>
    %161 = vector.extract_strided_slice %5 {offsets = [12, 0], sizes = [2, 4], strides = [1, 1]} : vector<16x4xf32> to vector<2x4xf32>
    %162 = vector.broadcast %155 : vector<2x1xf32> to vector<2x4xf32>
    %163 = vector.broadcast %6 : vector<1x4xf32> to vector<2x4xf32>
    %164 = arith.mulf %162, %163 : vector<2x4xf32>
    %165 = arith.addf %161, %164 : vector<2x4xf32>
    %166 = arith.negf %165 : vector<2x4xf32>
    %167 = math.exp %166 : vector<2x4xf32>
    %cst_18 = arith.constant 1.000000e+00 : f32
    %168 = vector.broadcast %cst_18 : f32 to vector<2x4xf32>
    %169 = arith.addf %168, %167 : vector<2x4xf32>
    %170 = arith.divf %168, %169 : vector<2x4xf32>
    %171 = vector.extract_strided_slice %165 {offsets = [0, 2], sizes = [2, 1], strides = [1, 1]} : vector<2x4xf32> to vector<2x1xf32>
    %172 = math.tanh %171 : vector<2x1xf32>
    %173 = vector.extract_strided_slice %170 {offsets = [0, 1], sizes = [2, 1], strides = [1, 1]} : vector<2x4xf32> to vector<2x1xf32>
    %174 = arith.mulf %173, %152 : vector<2x1xf32>
    %175 = vector.extract_strided_slice %170 {offsets = [0, 0], sizes = [2, 1], strides = [1, 1]} : vector<2x4xf32> to vector<2x1xf32>
    %176 = arith.mulf %175, %172 : vector<2x1xf32>
    %177 = arith.addf %174, %176 : vector<2x1xf32>
    %178 = vector.extract_strided_slice %170 {offsets = [0, 3], sizes = [2, 1], strides = [1, 1]} : vector<2x4xf32> to vector<2x1xf32>
    %179 = math.tanh %177 : vector<2x1xf32>
    %180 = arith.mulf %178, %179 : vector<2x1xf32>
    %c6_i32 = arith.constant 6 : i32
    %181 = vector.broadcast %c6_i32 : i32 to vector<2x8xi32>
    %182 = arith.cmpi eq, %9, %181 : vector<2x8xi32>
    %183 = vector.shape_cast %180 : vector<2x1xf32> to vector<2x1xf32>
    %184 = vector.broadcast %183 : vector<2x1xf32> to vector<2x8xf32>
    %185 = arith.select %182, %184, %160 : vector<2x8xi1>, vector<2x8xf32>
    %186 = vector.extract_strided_slice %5 {offsets = [14, 0], sizes = [2, 4], strides = [1, 1]} : vector<16x4xf32> to vector<2x4xf32>
    %187 = vector.broadcast %180 : vector<2x1xf32> to vector<2x4xf32>
    %188 = vector.broadcast %6 : vector<1x4xf32> to vector<2x4xf32>
    %189 = arith.mulf %187, %188 : vector<2x4xf32>
    %190 = arith.addf %186, %189 : vector<2x4xf32>
    %191 = arith.negf %190 : vector<2x4xf32>
    %192 = math.exp %191 : vector<2x4xf32>
    %cst_19 = arith.constant 1.000000e+00 : f32
    %193 = vector.broadcast %cst_19 : f32 to vector<2x4xf32>
    %194 = arith.addf %193, %192 : vector<2x4xf32>
    %195 = arith.divf %193, %194 : vector<2x4xf32>
    %196 = vector.extract_strided_slice %190 {offsets = [0, 2], sizes = [2, 1], strides = [1, 1]} : vector<2x4xf32> to vector<2x1xf32>
    %197 = math.tanh %196 : vector<2x1xf32>
    %198 = vector.extract_strided_slice %195 {offsets = [0, 1], sizes = [2, 1], strides = [1, 1]} : vector<2x4xf32> to vector<2x1xf32>
    %199 = arith.mulf %198, %177 : vector<2x1xf32>
    %200 = vector.extract_strided_slice %195 {offsets = [0, 0], sizes = [2, 1], strides = [1, 1]} : vector<2x4xf32> to vector<2x1xf32>
    %201 = arith.mulf %200, %197 : vector<2x1xf32>
    %202 = arith.addf %199, %201 : vector<2x1xf32>
    %203 = vector.extract_strided_slice %195 {offsets = [0, 3], sizes = [2, 1], strides = [1, 1]} : vector<2x4xf32> to vector<2x1xf32>
    %204 = math.tanh %202 : vector<2x1xf32>
    %205 = arith.mulf %203, %204 : vector<2x1xf32>
    %c7_i32 = arith.constant 7 : i32
    %206 = vector.broadcast %c7_i32 : i32 to vector<2x8xi32>
    %207 = arith.cmpi eq, %9, %206 : vector<2x8xi32>
    %208 = vector.shape_cast %205 : vector<2x1xf32> to vector<2x1xf32>
    %209 = vector.broadcast %208 : vector<2x1xf32> to vector<2x8xf32>
    %210 = arith.select %207, %209, %185 : vector<2x8xi1>, vector<2x8xf32>
    %c0_20 = arith.constant 0 : index
    %c0_21 = arith.constant 0 : index
    %211 = vector.load %arg6[%c0_20, %c0_21] : memref<2x8xf32, #tpu.memory_space<vmem>>, vector<2x8xf32>
    tpu.vector_store %arg6[%c0_20, %c0_21], %210 {strides = array<i32>} : memref<2x8xf32, #tpu.memory_space<vmem>>, vector<2x8xf32>,
    return
  }
}

</mosaic_0001>

<bundles_post_ra>
// kernel: tpu_custom_call.1
= control target key start
LH: loop header
LB: loop body
LE: loop exit
PB: predicated region body
PF: predicated region fallthrough
CT: control target
= control target key end

     0   :  { %vm42_vm0 = vcmask 1041408   ;;  %vm612_vm1 = vmmov 1   ;;  %vm35_vm3 = vcmask 80896   ;;  %v613_v5 = vmov 0   ;;  %s761_s0 = inlined_call_operand.vmem [shape: f32[16,10], index: 0, kind: input, shape index: {}]   ;;  %s762_s1 = inlined_call_operand.vmem [shape: f32[10,4], index: 1, kind: input, shape index: {}]   ;;  %s763_s2 = inlined_call_operand.vmem [shape: f32[1,4], index: 2, kind: input, shape index: {}]   ;;  %s764_s3 = inlined_call_operand.vmem [shape: f32[1,4], index: 3, kind: input, shape index: {}]   ;;  %s765_s4 = inlined_call_operand.vmem [shape: f32[2,1], index: 4, kind: input, shape index: {}]   ;;  %s766_s5 = inlined_call_operand.vmem [shape: f32[2,1], index: 5, kind: input, shape index: {}]   ;;  %s767_s6 = inlined_call_operand.hbm [shape: f32[2,8], index: 6, kind: output, shape index: {}]  }
   0x1   :  { %v26_v0 = vld [vmem:[%s762_s1] sm:$0xff]  ;;  %v27_v1 = vld [vmem:[%s762_s1 + $0x8] sm:$0x3]  ;;  %vm509_vm2 = vmpackc.low %vm42_vm0, %vm612_vm1  ;;  %521 = vset.pattern.permute.xlu0 %v613_v5 }
   0x2   :  { %v24_v2 = vld [vmem:[%s761_s0] sm:$0xff]  ;;  %v508_v3 = vpack.c.bf16 %v27_v1, %v26_v0 }
   0x3   :  { %v122_v4 = vld [vmem:[%s765_s4] sm:$0x3]  ;;  %505 = vmatprep.mubr.msk.f32.mxu0 %vm35_vm3, %v24_v2 }
   0x4   :  { %v123_v6 = vld [vmem:[%s766_s5] sm:$0x3] }
   0x5   :  { %11 = vsyncpa [#allocation3], 0  ;;  %510 = vmatprep.subr.msk.bf16.mxu0 %vm509_vm2, %v508_v3  ;;  %128 = vperm.xlu0 %521, %v122_v4   ;;  %v25_v7 = vld [vmem:[%s761_s0 + $0x8] sm:$0xff]  ;;  %s614_s8 = smov 1   ;;  %v676_v9 = vld [vmem:[%s763_s2] ss:$0 sm:$0xff] }
   0x6   :  { %513 = vmatpush3.bf16.msk.msra.mxu0 %vm509_vm2, %v508_v3  ;;  %147 = vrot.lane.b32.xlu1 %v123_v6, %s614_s8  ;;  %v484_v10 = vld [vmem:[%s764_s3] ss:$0 sm:$0xff]  ;;  %s615_s0 = smov 126   ;;  %v616_v28 = vmov 3   ;;  %s617_s2 = smov 2   ;;  %vm468_vm12 = vcmask 64518  }
   0x7   :  { %522 = vset.pattern.permute.xlu1 %v616_v28  ;;  %s618_s3 = smov [#allocation2]  }
   0x8   :  { %s476_s11 = sshll.u32 %s618_s3, 4  ;;  %s477_s11 = int_to_ptr.vmem [resolvable:$true] %s476_s11 }
   0x9   :  { %506 = vmatmul.mubr.msk.f32.vlgmr.msra.gmra.mrb[0].mxu0 %vm35_vm3, %v25_v7  ;;  %523 = vset.pattern.permute.xlu0 %v616_v28  ;;  %s588_s12 = scalar_lea.vmem %s477_s11, 32  ;;  %p593_p1 = scmp.lt.s32.totalorder %s477_s11, %s477_s11 }
   0xa   :  { %p589_p0 = scmp.ne.s32.totalorder %s477_s11, %s588_s12  ;;  %p594_p2 = scmp.lt.s32.totalorder %s588_s12, %s588_s12 }
   0xc   :  { %p595_p3 = por %p594_p2, %p593_p1 }
   0xe   :  { %p596_p4 = pnand %p595_p3, %p589_p0 }
  0x78   :  { %v148_v24 = vpop.permute.xlu1 %147 }
  0x84   :  { %v129_v8 = vpop.permute.xlu0 %128 }
  0x85   :  { %v137_v12 = vmul.f32 %v676_v9, %v129_v8 }
  0xdc   :  { %v507_v11 = vpop.f32.mrb[0].mxu0 }
  0xdd   :  { %v682_v13 = vadd.f32 %v507_v11, %v484_v10  ;;  %v112_v14 = vpop.f32.mrb[1].mxu0 }
  0xde   :  { %v684_v15 = vadd.f32 %v484_v10, %v112_v14 }
  0xe0   :  { %v138_v16 = vadd.f32 %v137_v12, %v684_v15 }
  0xe2   :  { %524 = vtanh.f32 %v138_v16  ;;  %v489_v18 = vmul.f32 -1.442695, %v138_v16 }
  0xe4   :  { %526 = vpow2.f32 %v489_v18 }
  0xec   :  { %v525_v17 = vpop.eup %524 }
  0xed   :  { %152 = vrot.lane.b32.xlu0 %v525_v17, %s615_s0 }
  0xee   :  { %v527_v19 = vpop.eup %526 }
  0xef   :  { %v142_v20 = vadd.f32 1.0, %v527_v19 }
  0xf1   :  { %528 = vrcp.f32 %v142_v20 }
  0xfb   :  { %v529_v21 = vpop.eup %528 }
  0xfc   :  { %v150_v25 = vmul.f32 %v529_v21, %v148_v24 }
 0x15f   :  { %v153_v22 = vpop.permute.xlu0 %152 }
 0x160   :  { %v155_v23 = vmul.f32 %v529_v21, %v153_v22 }
 0x162   :  { %157 = vrot.lane.b32.xlu1 %v155_v23, %s614_s8 }
 0x1d4   :  { %v158_v26 = vpop.permute.xlu1 %157 }
 0x1d5   :  { %v160_v27 = vadd.f32 %v158_v26, %v150_v25 }
 0x1d7   :  { %530 = vtanh.f32 %v160_v27  ;;  %v187_v43 = vrot.slane %v160_v27, 6 }
 0x1e1   :  { %v531_v29 = vpop.eup %530 }
 0x1e2   :  { %163 = vrot.lane.b32.xlu0 %v531_v29, %s617_s2 }
 0x254   :  { %v164_v30 = vpop.permute.xlu0 %163 }
 0x255   :  { %v166_v31 = vmul.f32 %v529_v21, %v164_v30 }
 0x257   :  { %170 = vperm.xlu1 %522, %v166_v31  }
 0x2d6   :  { %v690_v32 = vpop.permute.xlu1 %170 }
 0x2d7   :  { %v174_v33 = vmul.f32 %v676_v9, %v690_v32 }
 0x2d9   :  { %v176_v34 = vrot.slane %v174_v33, 6 }
 0x2db   :  { %v178_v35 = vadd.f32 %v176_v34, %v684_v15 }
 0x2dd   :  { %532 = vtanh.f32 %v178_v35  ;;  %v490_v37 = vmul.f32 -1.442695, %v178_v35 }
 0x2df   :  { %534 = vpow2.f32 %v490_v37 }
 0x2e7   :  { %v533_v36 = vpop.eup %532 }
 0x2e8   :  { %191 = vrot.lane.b32.xlu0 %v533_v36, %s615_s0 }
 0x2e9   :  { %v535_v38 = vpop.eup %534 }
 0x2ea   :  { %v182_v39 = vadd.f32 1.0, %v535_v38 }
 0x2ec   :  { %536 = vrcp.f32 %v182_v39 }
 0x2f6   :  { %v537_v40 = vpop.eup %536 }
 0x2f7   :  { %v189_v44 = vmul.f32 %v537_v40, %v187_v43 }
 0x35a   :  { %v192_v41 = vpop.permute.xlu0 %191 }
 0x35b   :  { %v194_v42 = vmul.f32 %v537_v40, %v192_v41 }
 0x35d   :  { %196 = vrot.lane.b32.xlu1 %v194_v42, %s614_s8 }
 0x3cf   :  { %v197_v45 = vpop.permute.xlu1 %196 }
 0x3d0   :  { %v199_v46 = vadd.f32 %v197_v45, %v189_v44 }
 0x3d2   :  { %538 = vtanh.f32 %v199_v46  ;;  %v229_v61 = vrot.slane %v199_v46, 6 }
 0x3dc   :  { %v539_v47 = vpop.eup %538 }
 0x3dd   :  { %202 = vrot.lane.b32.xlu0 %v539_v47, %s617_s2 }
 0x44f   :  { %v203_v48 = vpop.permute.xlu0 %202 }
 0x450   :  { %v205_v49 = vmul.f32 %v537_v40, %v203_v48 }
 0x452   :  { %209 = vperm.xlu1 %522, %v205_v49  }
 0x4d1   :  { %v698_v50 = vpop.permute.xlu1 %209 }
 0x4d2   :  { %v216_v51 = vmul.f32 %v676_v9, %v698_v50 }
 0x4d4   :  { %v218_v52 = vrot.slane %v216_v51, 6 }
 0x4d6   :  { %v220_v53 = vadd.f32 %v218_v52, %v684_v15 }
 0x4d8   :  { %540 = vtanh.f32 %v220_v53  ;;  %v491_v55 = vmul.f32 -1.442695, %v220_v53 }
 0x4da   :  { %542 = vpow2.f32 %v491_v55 }
 0x4e2   :  { %v541_v54 = vpop.eup %540 }
 0x4e3   :  { %233 = vrot.lane.b32.xlu0 %v541_v54, %s615_s0 }
 0x4e4   :  { %v543_v56 = vpop.eup %542 }
 0x4e5   :  { %v224_v57 = vadd.f32 1.0, %v543_v56 }
 0x4e7   :  { %544 = vrcp.f32 %v224_v57 }
 0x4f1   :  { %v545_v58 = vpop.eup %544 }
 0x4f2   :  { %v231_v62 = vmul.f32 %v545_v58, %v229_v61 }
 0x555   :  { %v234_v59 = vpop.permute.xlu0 %233 }
 0x556   :  { %v236_v60 = vmul.f32 %v545_v58, %v234_v59 }
 0x558   :  { %238 = vrot.lane.b32.xlu1 %v236_v60, %s614_s8 }
 0x5ca   :  { %v239_v63 = vpop.permute.xlu1 %238 }
 0x5cb   :  { %v241_v0 = vadd.f32 %v239_v63, %v231_v62 }
 0x5cd   :  { %546 = vtanh.f32 %v241_v0  ;;  %v271_v18 = vrot.slane %v241_v0, 6 }
 0x5d7   :  { %v547_v1 = vpop.eup %546 }
 0x5d8   :  { %244 = vrot.lane.b32.xlu0 %v547_v1, %s617_s2 }
 0x64a   :  { %v245_v2 = vpop.permute.xlu0 %244 }
 0x64b   :  { %v247_v3 = vmul.f32 %v545_v58, %v245_v2 }
 0x64d   :  { %251 = vperm.xlu1 %522, %v247_v3  }
 0x6cc   :  { %v706_v4 = vpop.permute.xlu1 %251 }
 0x6cd   :  { %v258_v5 = vmul.f32 %v676_v9, %v706_v4 }
 0x6cf   :  { %v260_v6 = vrot.slane %v258_v5, 6 }
 0x6d1   :  { %v262_v7 = vadd.f32 %v260_v6, %v684_v15 }
 0x6d3   :  { %548 = vtanh.f32 %v262_v7  ;;  %v492_v10 = vmul.f32 -1.442695, %v262_v7 }
 0x6d5   :  { %550 = vpow2.f32 %v492_v10 }
 0x6dd   :  { %v549_v8 = vpop.eup %548 }
 0x6de   :  { %275 = vrot.lane.b32.xlu0 %v549_v8, %s615_s0 }
 0x6df   :  { %v551_v11 = vpop.eup %550 }
 0x6e0   :  { %v266_v12 = vadd.f32 1.0, %v551_v11 }
 0x6e2   :  { %552 = vrcp.f32 %v266_v12 }
 0x6ec   :  { %v553_v14 = vpop.eup %552 }
 0x6ed   :  { %v273_v19 = vmul.f32 %v553_v14, %v271_v18 }
 0x750   :  { %v276_v16 = vpop.permute.xlu0 %275 }
 0x751   :  { %v278_v17 = vmul.f32 %v553_v14, %v276_v16 }
 0x753   :  { %280 = vrot.lane.b32.xlu1 %v278_v17, %s614_s8 }
 0x7c5   :  { %v281_v20 = vpop.permute.xlu1 %280 }
 0x7c6   :  { %v283_v21 = vadd.f32 %v281_v20, %v273_v19 }
 0x7c8   :  { %554 = vtanh.f32 %v283_v21  ;;  %v313_v36 = vrot.slane %v283_v21, 6 }
 0x7d2   :  { %v555_v15 = vpop.eup %554 }
 0x7d3   :  { %286 = vrot.lane.b32.xlu0 %v555_v15, %s617_s2 }
 0x845   :  { %v287_v22 = vpop.permute.xlu0 %286 }
 0x846   :  { %v289_v23 = vmul.f32 %v553_v14, %v287_v22 }
 0x848   :  { %293 = vperm.xlu1 %522, %v289_v23  }
 0x8c7   :  { %v714_v24 = vpop.permute.xlu1 %293 }
 0x8c8   :  { %v300_v25 = vmul.f32 %v676_v9, %v714_v24 }
 0x8ca   :  { %v302_v26 = vrot.slane %v300_v25, 6 }
 0x8cc   :  { %v304_v27 = vadd.f32 %v302_v26, %v682_v13 }
 0x8ce   :  { %556 = vtanh.f32 %v304_v27  ;;  %v493_v29 = vmul.f32 -1.442695, %v304_v27 }
 0x8d0   :  { %558 = vpow2.f32 %v493_v29 }
 0x8d8   :  { %v557_v28 = vpop.eup %556 }
 0x8d9   :  { %317 = vrot.lane.b32.xlu0 %v557_v28, %s615_s0 }
 0x8da   :  { %v559_v30 = vpop.eup %558 }
 0x8db   :  { %v308_v31 = vadd.f32 1.0, %v559_v30 }
 0x8dd   :  { %560 = vrcp.f32 %v308_v31 }
 0x8e7   :  { %v561_v33 = vpop.eup %560 }
 0x8e8   :  { %v315_v37 = vmul.f32 %v561_v33, %v313_v36 }
 0x94b   :  { %v318_v34 = vpop.permute.xlu0 %317 }
 0x94c   :  { %v320_v35 = vmul.f32 %v561_v33, %v318_v34 }
 0x94e   :  { %322 = vrot.lane.b32.xlu1 %v320_v35, %s614_s8 }
 0x9c0   :  { %v323_v38 = vpop.permute.xlu1 %322 }
 0x9c1   :  { %v325_v39 = vadd.f32 %v323_v38, %v315_v37  ;;  %v124_v37 = vlaneseq }
 0x9c3   :  { %562 = vtanh.f32 %v325_v39  ;;  %v355_v55 = vrot.slane %v325_v39, 6  ;;  %v125_v38 = vand.u32 127, %v124_v37 }
 0x9c5   :  { %vm167_vm4 = vcmp.eq.s32.totalorder %v125_v38, 0  ;;  %vm206_vm5 = vcmp.eq.s32.totalorder %v125_v38, 1  ;;  %vm248_vm6 = vcmp.eq.s32.totalorder %v125_v38, 2  ;;  %vm290_vm7 = vcmp.eq.s32.totalorder %v125_v38, 3 }
 0x9c6   :  { %v173_v39 = vsel %vm167_vm4, %v690_v32, 0.0  ;;  %vm332_vm8 = vcmp.eq.s32.totalorder %v125_v38, 4  ;;  %vm374_vm9 = vcmp.eq.s32.totalorder %v125_v38, 5  ;;  %vm416_vm10 = vcmp.eq.s32.totalorder %v125_v38, 6 }
 0x9c7   :  { %vm458_vm11 = vcmp.eq.s32.totalorder %v125_v38, 7 }
 0x9cd   :  { %v563_v40 = vpop.eup %562 }
 0x9ce   :  { %328 = vrot.lane.b32.xlu0 %v563_v40, %s617_s2  ;;  %v213_v40 = vrot.slane %v173_v39, 6 }
 0xa40   :  { %v329_v41 = vpop.permute.xlu0 %328 }
 0xa41   :  { %v331_v42 = vmul.f32 %v561_v33, %v329_v41  ;;  %v215_v41 = vsel %vm206_vm5, %v698_v50, %v213_v40 }
 0xa43   :  { %335 = vperm.xlu1 %522, %v331_v42   ;;  %v255_v42 = vrot.slane %v215_v41, 6 }
 0xac2   :  { %v722_v43 = vpop.permute.xlu1 %335 }
 0xac3   :  { %v342_v44 = vmul.f32 %v676_v9, %v722_v43 }
 0xac5   :  { %v344_v45 = vrot.slane %v342_v44, 6  ;;  %v257_v44 = vsel %vm248_vm6, %v706_v4, %v255_v42 }
 0xac7   :  { %v346_v46 = vadd.f32 %v344_v45, %v682_v13  ;;  %v297_v45 = vrot.slane %v257_v44, 6 }
 0xac9   :  { %564 = vtanh.f32 %v346_v46  ;;  %v494_v48 = vmul.f32 -1.442695, %v346_v46  ;;  %v299_v46 = vsel %vm290_vm7, %v714_v24, %v297_v45 }
 0xacb   :  { %566 = vpow2.f32 %v494_v48 }
 0xad3   :  { %v565_v47 = vpop.eup %564 }
 0xad4   :  { %359 = vrot.lane.b32.xlu0 %v565_v47, %s615_s0  ;;  %v339_v47 = vrot.slane %v299_v46, 6 }
 0xad5   :  { %v567_v49 = vpop.eup %566 }
 0xad6   :  { %v350_v51 = vadd.f32 1.0, %v567_v49  ;;  %v341_v48 = vsel %vm332_vm8, %v722_v43, %v339_v47 }
 0xad7   :  { %v381_v49 = vrot.slane %v341_v48, 6 }
 0xad8   :  { %568 = vrcp.f32 %v350_v51 }
 0xae2   :  { %v569_v52 = vpop.eup %568 }
 0xae3   :  { %v357_v56 = vmul.f32 %v569_v52, %v355_v55 }
 0xb46   :  { %v360_v53 = vpop.permute.xlu0 %359 }
 0xb47   :  { %v362_v54 = vmul.f32 %v569_v52, %v360_v53 }
 0xb49   :  { %364 = vrot.lane.b32.xlu1 %v362_v54, %s614_s8 }
 0xbbb   :  { %v365_v57 = vpop.permute.xlu1 %364 }
 0xbbc   :  { %v367_v58 = vadd.f32 %v365_v57, %v357_v56 }
 0xbbe   :  { %570 = vtanh.f32 %v367_v58  ;;  %v397_v11 = vrot.slane %v367_v58, 6 }
 0xbc8   :  { %v571_v59 = vpop.eup %570 }
 0xbc9   :  { %370 = vrot.lane.b32.xlu0 %v571_v59, %s617_s2 }
 0xc3b   :  { %v371_v60 = vpop.permute.xlu0 %370 }
 0xc3c   :  { %v373_v61 = vmul.f32 %v569_v52, %v371_v60 }
 0xc3e   :  { %377 = vperm.xlu1 %522, %v373_v61  }
 0xcbd   :  { %v730_v62 = vpop.permute.xlu1 %377 }
 0xcbe   :  { %v384_v63 = vmul.f32 %v676_v9, %v730_v62  ;;  %v383_v32 = vsel %vm374_vm9, %v730_v62, %v381_v49 }
 0xcbf   :  { %v423_v51 = vrot.slane %v383_v32, 6 }
 0xcc0   :  { %v386_v0 = vrot.slane %v384_v63, 6 }
 0xcc2   :  { %v388_v1 = vadd.f32 %v386_v0, %v682_v13 }
 0xcc4   :  { %572 = vtanh.f32 %v388_v1  ;;  %v495_v3 = vmul.f32 -1.442695, %v388_v1 }
 0xcc6   :  { %574 = vpow2.f32 %v495_v3 }
 0xcce   :  { %v573_v2 = vpop.eup %572 }
 0xccf   :  { %401 = vrot.lane.b32.xlu0 %v573_v2, %s615_s0 }
 0xcd0   :  { %v575_v5 = vpop.eup %574 }
 0xcd1   :  { %v392_v6 = vadd.f32 1.0, %v575_v5 }
 0xcd3   :  { %576 = vrcp.f32 %v392_v6 }
 0xcdd   :  { %v577_v7 = vpop.eup %576 }
 0xcde   :  { %v399_v12 = vmul.f32 %v577_v7, %v397_v11 }
 0xd41   :  { %v402_v8 = vpop.permute.xlu0 %401 }
 0xd42   :  { %v404_v10 = vmul.f32 %v577_v7, %v402_v8 }
 0xd44   :  { %406 = vrot.lane.b32.xlu1 %v404_v10, %s614_s8 }
 0xdb6   :  { %v407_v14 = vpop.permute.xlu1 %406 }
 0xdb7   :  { %v409_v16 = vadd.f32 %v407_v14, %v399_v12 }
 0xdb9   :  { %578 = vtanh.f32 %v409_v16  ;;  %v439_v31 = vrot.slane %v409_v16, 6 }
 0xdc3   :  { %v579_v17 = vpop.eup %578 }
 0xdc4   :  { %412 = vrot.lane.b32.xlu0 %v579_v17, %s617_s2 }
 0xe36   :  { %v413_v18 = vpop.permute.xlu0 %412 }
 0xe37   :  { %v415_v19 = vmul.f32 %v577_v7, %v413_v18 }
 0xe39   :  { %419 = vperm.xlu1 %522, %v415_v19  }
 0xeb8   :  { %v420_v20 = vpop.permute.xlu1 %419 }
 0xeb9   :  { %v426_v21 = vmul.f32 %v676_v9, %v420_v20  ;;  %v425_v52 = vsel %vm416_vm10, %v420_v20, %v423_v51 }
 0xeba   :  { %v465_v50 = vrot.slane %v425_v52, 6 }
 0xebb   :  { %v428_v15 = vrot.slane %v426_v21, 6 }
 0xebd   :  { %v430_v22 = vadd.f32 %v428_v15, %v682_v13 }
 0xebf   :  { %580 = vtanh.f32 %v430_v22  ;;  %v496_v25 = vmul.f32 -1.442695, %v430_v22 }
 0xec1   :  { %582 = vpow2.f32 %v496_v25 }
 0xec9   :  { %v581_v23 = vpop.eup %580 }
 0xeca   :  { %443 = vrot.lane.b32.xlu0 %v581_v23, %s615_s0 }
 0xecb   :  { %v583_v26 = vpop.eup %582 }
 0xecc   :  { %v434_v27 = vadd.f32 1.0, %v583_v26 }
 0xece   :  { %584 = vrcp.f32 %v434_v27 }
 0xed8   :  { %v585_v28 = vpop.eup %584 }
 0xed9   :  { %v441_v33 = vmul.f32 %v585_v28, %v439_v31 }
 0xf3c   :  { %v444_v29 = vpop.permute.xlu0 %443 }
 0xf3d   :  { %v446_v30 = vmul.f32 %v585_v28, %v444_v29 }
 0xf3f   :  { %448 = vrot.lane.b32.xlu1 %v446_v30, %s614_s8 }
 0xfb1   :  { %v449_v9 = vpop.permute.xlu1 %448 }
 0xfb2   :  { %v451_v34 = vadd.f32 %v449_v9, %v441_v33 }
 0xfb4   :  { %586 = vtanh.f32 %v451_v34 }
 0xfbe   :  { %v587_v13 = vpop.eup %586 }
 0xfbf   :  { %454 = vrot.lane.b32.xlu0 %v587_v13, %s617_s2 }
0x1031   :  { %v455_v35 = vpop.permute.xlu0 %454 }
0x1032   :  { %v457_v36 = vmul.f32 %v585_v28, %v455_v35 }
0x1034   :  { %461 = vperm.xlu1 %522, %v457_v36  }
0x10b3   :  { %v462_v4 = vpop.permute.xlu1 %461 }
0x10b4   :  { %v467_v53 = vsel %vm458_vm11, %v462_v4, %v465_v50 }
0x10b5   :  { %469 = vst.msk [vmem:[#allocation2 - $0x6] sm:$0xc0] %vm468_vm12, %v467_v53 }
0x10b6   :  { %599 = shalt.err (!%p596_p4)
}
0x10b7   :  { %s600_s15 = scalar_lea.hbm %s767_s6, 32 }
0x10b8   :  { %p601_p5 = scmp.ne.s32.totalorder %s767_s6, %s600_s15  ;;  %p604_p6 = scmp.lt.u32.totalorder %s600_s15, %s767_s6 }
0x10ba   :  { %p606_p7 = pnand %p604_p6, %p601_p5 }
0x10bc   :  { %609 = shalt.err (!%p606_p7)
}
0x10bd   :  { %479 = dma.vmem_to_hbm [thread:$0]  %s477_s11, 32, %s767_s6, [#allocation3]  }
0x10be   :  { %610 = dma.done.wait [#allocation3], 32  }
0x10bf   :  { %611 = vsyncadd [#allocation3], 4294967264 }
0x10c0   :  { %483 = vsyncpa [#allocation3], 1 }

</bundles_post_ra>
